<compile_context>
chip_gen: v6e
topology: v6e:2x2x1
jax: 0.10.0
libtpu: 0.0.40
codegen_flags: <defaults>
</compile_context>

<pallas_src>
import jax
import jax.numpy as jnp
from jax.experimental import pallas as pl
from jax.experimental.pallas import tpu as pltpu


# ---------------------------------------------------------------------------
# Kernel
# ---------------------------------------------------------------------------
def mlp_latent_encoder_kernel(x_ref, w1_ref, b1_ref, w2_ref, b2_ref,
                              w3_ref, b3_ref, out_ref):
    x = x_ref[...]
    # MXU matmuls with f32 accumulation; bias-add / ReLU stay f32 elementwise.
    h1 = jnp.dot(x, w1_ref[...], preferred_element_type=jnp.float32)
    h1 = jnp.maximum(h1 + b1_ref[...], 0.0)
    h2 = jnp.dot(h1.astype(w2_ref.dtype), w2_ref[...],
                 preferred_element_type=jnp.float32)
    h2 = jnp.maximum(h2 + b2_ref[...], 0.0)
    h3 = jnp.dot(h2.astype(w3_ref.dtype), w3_ref[...],
                 preferred_element_type=jnp.float32)
    out_ref[...] = (h3 + b3_ref[...]).astype(out_ref.dtype)


# ---------------------------------------------------------------------------
# Helpers
# ---------------------------------------------------------------------------
def _round_up(n, m):
    return ((n + m - 1) // m) * m


def _pad2(a, rows, cols):
    pr, pc = rows - a.shape[0], cols - a.shape[1]
    if pr or pc:
        a = jnp.pad(a, ((0, pr), (0, pc)))
    return a


def _tile_bytes(rows, cols, dtype):
    """Approximate VMEM bytes of a (rows, cols) buffer with (8,128) tiling."""
    itemsize = jnp.dtype(dtype).itemsize
    sub = 8 * max(1, 4 // itemsize)       # 8 sublanes (f32) / 16 (bf16)
    return _round_up(max(rows, 1), sub) * _round_up(max(cols, 1), 128) * itemsize


def prepare_params(params, compute_dtype=jnp.bfloat16):
    """One-time pad + cast of the weights (hoisted out of the per-call path).

    Only the hidden dim is lane-padded to a multiple of 128.  Zero padding is
    exact: padded hidden columns are relu(0 + 0) = 0 and the corresponding
    padded weight rows contribute nothing downstream.
    """
    in_dim, hid = params["w1"].shape
    out_dim = params["w3"].shape[1]
    hid_p = _round_up(hid, 128)
    return {
        "w1": _pad2(params["w1"], in_dim, hid_p).astype(compute_dtype),
        "w2": _pad2(params["w2"], hid_p, hid_p).astype(compute_dtype),
        "w3": _pad2(params["w3"], hid_p, out_dim).astype(compute_dtype),
        "b1": _pad2(params["b1"].reshape(1, -1), 1, hid_p).astype(jnp.float32),
        "b2": _pad2(params["b2"].reshape(1, -1), 1, hid_p).astype(jnp.float32),
        "b3": params["b3"].reshape(1, -1).astype(jnp.float32),
        "in_dim": in_dim, "hid": hid, "hid_p": hid_p, "out_dim": out_dim,
        "compute_dtype": jnp.dtype(compute_dtype),
    }


def _choose_tiling(batch, hid_p, tm_max=None):
    """Steps-first tile selection (pads <8 rows; >=2 steps for v7x megacore)."""
    if tm_max is None:
        # Tiny weights -> mem-bound on activations: bigger tiles amortize the
        # ~0.35us per-step overhead.  Otherwise keep tiles modest for VMEM.
        tm_max = 1024 if hid_p <= 512 else 256
    tm_max = max(8, _round_up(tm_max, 8))
    steps = max(1, -(-batch // tm_max))
    if steps == 1 and batch >= 16:
        steps = 2                          # give both v7x TensorCores work
    tm = max(8, _round_up(-(-batch // steps), 8))
    return tm, steps * tm


# ---------------------------------------------------------------------------
# pallas_call wrapper
# ---------------------------------------------------------------------------
def _forward(x_p, prep, tm, batch_p, single_buffer_weights):
    in_dim, hid_p, out_dim = prep["in_dim"], prep["hid_p"], prep["out_dim"]
    cdtype = prep["compute_dtype"]
    grid = (batch_p // tm,)

    def resident(shape):
        zero = lambda i: (0, 0)
        if single_buffer_weights:
            return pl.BlockSpec(shape, zero, pipeline_mode=pl.Buffered(1))
        return pl.BlockSpec(shape, zero)

    in_specs = [
        pl.BlockSpec((tm, in_dim), lambda i: (i, 0)),        # pipelined x
        resident((in_dim, hid_p)), resident((1, hid_p)),     # fc1
        resident((hid_p, hid_p)), resident((1, hid_p)),      # fc2
        resident((hid_p, out_dim)), resident((1, out_dim)),  # fc3
    ]
    out_spec = pl.BlockSpec((tm, out_dim), lambda i: (i, 0))

    # --- VMEM budget: resident weights/biases + double-buffered x/out +
    #     f32 h1/h2 intermediates (and their compute-dtype copies), +25%. ----
    n_wbuf = 1 if single_buffer_weights else 2
    wbytes = (_tile_bytes(in_dim, hid_p, cdtype)
              + _tile_bytes(hid_p, hid_p, cdtype)
              + _tile_bytes(hid_p, out_dim, cdtype)
              + 2 * _tile_bytes(1, hid_p, jnp.float32)
              + _tile_bytes(1, out_dim, jnp.float32)) * n_wbuf
    abytes = 2 * (_tile_bytes(tm, in_dim, cdtype)
                  + _tile_bytes(tm, out_dim, jnp.float32))
    ibytes = 2 * (_tile_bytes(tm, hid_p, jnp.float32)
                  + _tile_bytes(tm, hid_p, cdtype))
    vmem_limit = max(int(1.25 * (wbytes + abytes + ibytes)) + (2 << 20),
                     16 << 20)
    # TODO(synk): tiled-weight fallback (grid over hid_p with a pl.when-managed
    # f32 accumulator) for v7x (64 MiB/TC) once bf16 weights exceed ~24-32 MiB.

    flops = 2 * batch_p * (in_dim * hid_p + hid_p * hid_p + hid_p * out_dim)
    bytes_accessed = (batch_p * in_dim * cdtype.itemsize
                      + (in_dim + hid_p + out_dim) * hid_p * cdtype.itemsize
                      + (2 * hid_p + out_dim) * 4
                      + batch_p * out_dim * 4)

    return pl.pallas_call(
        mlp_latent_encoder_kernel,
        out_shape=jax.ShapeDtypeStruct((batch_p, out_dim), jnp.float32),
        grid=grid,
        in_specs=in_specs,
        out_specs=out_spec,
        compiler_params=pltpu.CompilerParams(
            dimension_semantics=("parallel",),      # batch axis -> v7x megacore
            vmem_limit_bytes=int(vmem_limit)),
        cost_estimate=pl.CostEstimate(flops=int(flops), transcendentals=0,
                                      bytes_accessed=int(bytes_accessed)),
    )(x_p, prep["w1"], prep["b1"], prep["w2"], prep["b2"],
      prep["w3"], prep["b3"])


_SINGLE_BUFFER_OK = [None]   # cache: does this JAX support pipeline_mode=Buffered(1)?


def mlp_latent_encoder(x, prep, *, tm_max=None):
    """Forward pass.  `prep` comes from prepare_params (pad/cast done once)."""
    batch, in_dim = x.shape
    assert in_dim == prep["in_dim"], (in_dim, prep["in_dim"])
    tm, batch_p = _choose_tiling(batch, prep["hid_p"], tm_max)
    x_p = x if batch_p == batch else jnp.pad(x, ((0, batch_p - batch), (0, 0)))
    x_p = x_p.astype(prep["compute_dtype"])

    single = _SINGLE_BUFFER_OK[0]
    if single is None:
        single = hasattr(pl, "Buffered")
    if single:
        try:
            out = _forward(x_p, prep, tm, batch_p, True)
            _SINGLE_BUFFER_OK[0] = True
        except Exception:               # pipeline_mode unsupported -> default
            _SINGLE_BUFFER_OK[0] = False
            out = _forward(x_p, prep, tm, batch_p, False)
    else:
        out = _forward(x_p, prep, tm, batch_p, False)

    return out[:batch] if batch_p != batch else out


# ---------------------------------------------------------------------------
# Parameter init (mirrors the PyTorch module) + pure-JAX reference
# ---------------------------------------------------------------------------
def init_params(key, input_dim, latent_dim, hidden_dim, init_w=0.003):
    """fc1: in->hid, fc2: hid->hid, fc3: hid->2*latent with U(-init_w, init_w).
    Weights stored as (in, out) = torch weight.T; biases as (1, out)."""
    output_size = latent_dim * 2
    k = jax.random.split(key, 6)

    def linear_init(kw, kb, fan_in, fan_out):
        bound = 1.0 / jnp.sqrt(fan_in)  # PyTorch default init
        w = jax.random.uniform(kw, (fan_in, fan_out), jnp.float32, -bound, bound)
        b = jax.random.uniform(kb, (1, fan_out), jnp.float32, -bound, bound)
        return w, b

    w1, b1 = linear_init(k[0], k[1], input_dim, hidden_dim)
    w2, b2 = linear_init(k[2], k[3], hidden_dim, hidden_dim)
    w3 = jax.random.uniform(k[4], (hidden_dim, output_size), jnp.float32,
                            -init_w, init_w)
    b3 = jax.random.uniform(k[5], (1, output_size), jnp.float32,
                            -init_w, init_w)
    return {"w1": w1, "b1": b1, "w2": w2, "b2": b2, "w3": w3, "b3": b3}


def reference_forward(x, p):
    h1 = jnp.maximum(x @ p["w1"] + p["b1"], 0.0)
    h2 = jnp.maximum(h1 @ p["w2"] + p["b2"], 0.0)
    return h2 @ p["w3"] + p["b3"]


# ---------------------------------------------------------------------------
if __name__ == "__main__":
    key = jax.random.PRNGKey(0)
    k_x, k_p, k_x2 = jax.random.split(key, 3)

    batch, input_dim, latent_dim, hidden_dim = 8, 16, 4, 32
    x = jax.random.normal(k_x, (batch, input_dim), jnp.float32)
    params = init_params(k_p, input_dim, latent_dim, hidden_dim)
    ref = reference_forward(x, params)

    # 1) Exact (f32 MXU) opt-in mode.
    prep_f32 = prepare_params(params, compute_dtype=jnp.float32)
    out_f32 = jax.block_until_ready(mlp_latent_encoder(x, prep_f32))
    assert out_f32.shape == (batch, latent_dim * 2), out_f32.shape
    assert jnp.allclose(out_f32, ref, atol=1e-5, rtol=1e-5), "f32 mismatch"

    # 2) Default path: bf16 MXU inputs, f32 accumulation / bias / ReLU.
    prep_bf16 = prepare_params(params)            # bf16 is the default
    out_bf16 = jax.block_until_ready(mlp_latent_encoder(x, prep_bf16))
    assert out_bf16.shape == (batch, latent_dim * 2), out_bf16.shape
    assert jnp.allclose(out_bf16, ref, atol=2e-2, rtol=2e-2), "bf16 mismatch"

    # 3) Ragged batch exercising the grid (300 -> 2 steps of tm=152, 4 pad rows).
    x_big = jax.random.normal(k_x2, (300, input_dim), jnp.float32)
    ref_big = reference_forward(x_big, params)
    out_big = jax.block_until_ready(mlp_latent_encoder(x_big, prep_f32))
    assert out_big.shape == (300, latent_dim * 2), out_big.shape
    assert jnp.allclose(out_big, ref_big, atol=1e-5, rtol=1e-5), "grid mismatch"

    print("KERNEL_OK")
</pallas_src>

<mosaic_0001>
module attributes {stable_mosaic.version = 11 : i64} {
  func.func @mlp_latent_encoder_kernel(%arg0: i32, %arg1: memref<8x16xf32, #tpu.memory_space<vmem>>, %arg2: memref<16x128xf32, #tpu.memory_space<vmem>>, %arg3: memref<1x128xf32, #tpu.memory_space<vmem>>, %arg4: memref<128x128xf32, #tpu.memory_space<vmem>>, %arg5: memref<1x128xf32, #tpu.memory_space<vmem>>, %arg6: memref<128x8xf32, #tpu.memory_space<vmem>>, %arg7: memref<1x8xf32, #tpu.memory_space<vmem>>, %arg8: memref<8x8xf32, #tpu.memory_space<vmem>>) attributes {dimension_semantics = [#tpu.dimension_semantics<parallel>], iteration_bounds = array<i64: 1>, scalar_prefetch = 0 : i64, scratch_operands = 0 : i64, tpu.core_type = #tpu.core_type<tc>, window_params = [{transform_indices = @transform_0, window_bounds = array<i64: 8, 16>}, {pipeline_mode = #tpu.pipeline_mode<synchronous>, transform_indices = @transform_1, window_bounds = array<i64: 16, 128>}, {pipeline_mode = #tpu.pipeline_mode<synchronous>, transform_indices = @transform_2, window_bounds = array<i64: 1, 128>}, {pipeline_mode = #tpu.pipeline_mode<synchronous>, transform_indices = @transform_3, window_bounds = array<i64: 128, 128>}, {pipeline_mode = #tpu.pipeline_mode<synchronous>, transform_indices = @transform_4, window_bounds = array<i64: 1, 128>}, {pipeline_mode = #tpu.pipeline_mode<synchronous>, transform_indices = @transform_5, window_bounds = array<i64: 128, 8>}, {pipeline_mode = #tpu.pipeline_mode<synchronous>, transform_indices = @transform_6, window_bounds = array<i64: 1, 8>}, {transform_indices = @transform_7, window_bounds = array<i64: 8, 8>}]} {
    %c0 = arith.constant 0 : index
    %c0_0 = arith.constant 0 : index
    %0 = vector.load %arg1[%c0, %c0_0] : memref<8x16xf32, #tpu.memory_space<vmem>>, vector<8x16xf32>
    %c0_1 = arith.constant 0 : index
    %c0_2 = arith.constant 0 : index
    %1 = vector.load %arg2[%c0_1, %c0_2] : memref<16x128xf32, #tpu.memory_space<vmem>>, vector<16x128xf32>
    %cst = arith.constant dense<0.000000e+00> : vector<8x128xf32>
    %2 = tpu.matmul %0, %1, %cst {dimension_numbers = #tpu.dot_dimension_numbers<[1], [0], [0], [1], [0, 0, 1, 1], [], []>} : vector<8x16xf32>, vector<16x128xf32>, vector<8x128xf32> -> vector<8x128xf32>
    %c0_3 = arith.constant 0 : index
    %c0_4 = arith.constant 0 : index
    %3 = vector.load %arg3[%c0_3, %c0_4] : memref<1x128xf32, #tpu.memory_space<vmem>>, vector<1x128xf32>
    %4 = vector.broadcast %3 : vector<1x128xf32> to vector<8x128xf32>
    %5 = arith.addf %2, %4 : vector<8x128xf32>
    %cst_5 = arith.constant 0.000000e+00 : f32
    %6 = vector.broadcast %cst_5 : f32 to vector<8x128xf32>
    %7 = arith.maximumf %5, %6 : vector<8x128xf32>
    %c0_6 = arith.constant 0 : index
    %c0_7 = arith.constant 0 : index
    %8 = vector.load %arg4[%c0_6, %c0_7] : memref<128x128xf32, #tpu.memory_space<vmem>>, vector<128x128xf32>
    %cst_8 = arith.constant dense<0.000000e+00> : vector<8x128xf32>
    %9 = tpu.matmul %7, %8, %cst_8 {dimension_numbers = #tpu.dot_dimension_numbers<[1], [0], [0], [1], [0, 0, 1, 1], [], []>} : vector<8x128xf32>, vector<128x128xf32>, vector<8x128xf32> -> vector<8x128xf32>
    %c0_9 = arith.constant 0 : index
    %c0_10 = arith.constant 0 : index
    %10 = vector.load %arg5[%c0_9, %c0_10] : memref<1x128xf32, #tpu.memory_space<vmem>>, vector<1x128xf32>
    %11 = vector.broadcast %10 : vector<1x128xf32> to vector<8x128xf32>
    %12 = arith.addf %9, %11 : vector<8x128xf32>
    %cst_11 = arith.constant 0.000000e+00 : f32
    %13 = vector.broadcast %cst_11 : f32 to vector<8x128xf32>
    %14 = arith.maximumf %12, %13 : vector<8x128xf32>
    %c0_12 = arith.constant 0 : index
    %c0_13 = arith.constant 0 : index
    %15 = vector.load %arg6[%c0_12, %c0_13] : memref<128x8xf32, #tpu.memory_space<vmem>>, vector<128x8xf32>
    %cst_14 = arith.constant dense<0.000000e+00> : vector<8x8xf32>
    %16 = tpu.matmul %14, %15, %cst_14 {dimension_numbers = #tpu.dot_dimension_numbers<[1], [0], [0], [1], [0, 0, 1, 1], [], []>} : vector<8x128xf32>, vector<128x8xf32>, vector<8x8xf32> -> vector<8x8xf32>
    %c0_15 = arith.constant 0 : index
    %c0_16 = arith.constant 0 : index
    %17 = vector.load %arg7[%c0_15, %c0_16] : memref<1x8xf32, #tpu.memory_space<vmem>>, vector<1x8xf32>
    %18 = vector.broadcast %17 : vector<1x8xf32> to vector<8x8xf32>
    %19 = arith.addf %16, %18 : vector<8x8xf32>
    %c0_17 = arith.constant 0 : index
    %c0_18 = arith.constant 0 : index
    %20 = vector.load %arg8[%c0_17, %c0_18] : memref<8x8xf32, #tpu.memory_space<vmem>>, vector<8x8xf32>
    tpu.vector_store %arg8[%c0_17, %c0_18], %19 {strides = array<i32>} : memref<8x8xf32, #tpu.memory_space<vmem>>, vector<8x8xf32>,
    return
  }
  func.func @transform_0(%arg0: i32) -> (i32, i32) {
    %c0_i32 = arith.constant 0 : i32
    %c0_i32_0 = arith.constant 0 : i32
    return %arg0, %c0_i32 : i32, i32
  }
  func.func @transform_1(%arg0: i32) -> (i32, i32) {
    %c0_i32 = arith.constant 0 : i32
    %c0_i32_0 = arith.constant 0 : i32
    %c0_i32_1 = arith.constant 0 : i32
    return %c0_i32, %c0_i32_0 : i32, i32
  }
  func.func @transform_2(%arg0: i32) -> (i32, i32) {
    %c0_i32 = arith.constant 0 : i32
    %c0_i32_0 = arith.constant 0 : i32
    %c0_i32_1 = arith.constant 0 : i32
    return %c0_i32, %c0_i32_0 : i32, i32
  }
  func.func @transform_3(%arg0: i32) -> (i32, i32) {
    %c0_i32 = arith.constant 0 : i32
    %c0_i32_0 = arith.constant 0 : i32
    %c0_i32_1 = arith.constant 0 : i32
    return %c0_i32, %c0_i32_0 : i32, i32
  }
  func.func @transform_4(%arg0: i32) -> (i32, i32) {
    %c0_i32 = arith.constant 0 : i32
    %c0_i32_0 = arith.constant 0 : i32
    %c0_i32_1 = arith.constant 0 : i32
    return %c0_i32, %c0_i32_0 : i32, i32
  }
  func.func @transform_5(%arg0: i32) -> (i32, i32) {
    %c0_i32 = arith.constant 0 : i32
    %c0_i32_0 = arith.constant 0 : i32
    %c0_i32_1 = arith.constant 0 : i32
    return %c0_i32, %c0_i32_0 : i32, i32
  }
  func.func @transform_6(%arg0: i32) -> (i32, i32) {
    %c0_i32 = arith.constant 0 : i32
    %c0_i32_0 = arith.constant 0 : i32
    %c0_i32_1 = arith.constant 0 : i32
    return %c0_i32, %c0_i32_0 : i32, i32
  }
  func.func @transform_7(%arg0: i32) -> (i32, i32) {
    %c0_i32 = arith.constant 0 : i32
    %c0_i32_0 = arith.constant 0 : i32
    return %arg0, %c0_i32 : i32, i32
  }
}

module attributes {stable_mosaic.version = 11 : i64} {
  func.func @mlp_latent_encoder_kernel(%arg0: i32, %arg1: memref<8x16xf32, #tpu.memory_space<vmem>>, %arg2: memref<16x128xf32, #tpu.memory_space<vmem>>, %arg3: memref<1x128xf32, #tpu.memory_space<vmem>>, %arg4: memref<128x128xf32, #tpu.memory_space<vmem>>, %arg5: memref<1x128xf32, #tpu.memory_space<vmem>>, %arg6: memref<128x8xf32, #tpu.memory_space<vmem>>, %arg7: memref<1x8xf32, #tpu.memory_space<vmem>>, %arg8: memref<8x8xf32, #tpu.memory_space<vmem>>) attributes {dimension_semantics = [#tpu.dimension_semantics<parallel>], iteration_bounds = array<i64: 1>, scalar_prefetch = 0 : i64, scratch_operands = 0 : i64, tpu.core_type = #tpu.core_type<tc>, window_params = [{transform_indices = @transform_0, window_bounds = array<i64: 8, 16>}, {pipeline_mode = #tpu.pipeline_mode<synchronous>, transform_indices = @transform_1, window_bounds = array<i64: 16, 128>}, {pipeline_mode = #tpu.pipeline_mode<synchronous>, transform_indices = @transform_2, window_bounds = array<i64: 1, 128>}, {pipeline_mode = #tpu.pipeline_mode<synchronous>, transform_indices = @transform_3, window_bounds = array<i64: 128, 128>}, {pipeline_mode = #tpu.pipeline_mode<synchronous>, transform_indices = @transform_4, window_bounds = array<i64: 1, 128>}, {pipeline_mode = #tpu.pipeline_mode<synchronous>, transform_indices = @transform_5, window_bounds = array<i64: 128, 8>}, {pipeline_mode = #tpu.pipeline_mode<synchronous>, transform_indices = @transform_6, window_bounds = array<i64: 1, 8>}, {transform_indices = @transform_7, window_bounds = array<i64: 8, 8>}]} {
    %c0 = arith.constant 0 : index
    %c0_0 = arith.constant 0 : index
    %0 = vector.load %arg1[%c0, %c0_0] : memref<8x16xf32, #tpu.memory_space<vmem>>, vector<8x16xf32>
    %c0_1 = arith.constant 0 : index
    %c0_2 = arith.constant 0 : index
    %1 = vector.load %arg2[%c0_1, %c0_2] : memref<16x128xf32, #tpu.memory_space<vmem>>, vector<16x128xf32>
    %cst = arith.constant dense<0.000000e+00> : vector<8x128xf32>
    %2 = tpu.matmul %0, %1, %cst {dimension_numbers = #tpu.dot_dimension_numbers<[1], [0], [0], [1], [0, 0, 1, 1], [], []>} : vector<8x16xf32>, vector<16x128xf32>, vector<8x128xf32> -> vector<8x128xf32>
    %c0_3 = arith.constant 0 : index
    %c0_4 = arith.constant 0 : index
    %3 = vector.load %arg3[%c0_3, %c0_4] : memref<1x128xf32, #tpu.memory_space<vmem>>, vector<1x128xf32>
    %4 = vector.broadcast %3 : vector<1x128xf32> to vector<8x128xf32>
    %5 = arith.addf %2, %4 : vector<8x128xf32>
    %cst_5 = arith.constant 0.000000e+00 : f32
    %6 = vector.broadcast %cst_5 : f32 to vector<8x128xf32>
    %7 = arith.maximumf %5, %6 : vector<8x128xf32>
    %c0_6 = arith.constant 0 : index
    %c0_7 = arith.constant 0 : index
    %8 = vector.load %arg4[%c0_6, %c0_7] : memref<128x128xf32, #tpu.memory_space<vmem>>, vector<128x128xf32>
    %cst_8 = arith.constant dense<0.000000e+00> : vector<8x128xf32>
    %9 = tpu.matmul %7, %8, %cst_8 {dimension_numbers = #tpu.dot_dimension_numbers<[1], [0], [0], [1], [0, 0, 1, 1], [], []>} : vector<8x128xf32>, vector<128x128xf32>, vector<8x128xf32> -> vector<8x128xf32>
    %c0_9 = arith.constant 0 : index
    %c0_10 = arith.constant 0 : index
    %10 = vector.load %arg5[%c0_9, %c0_10] : memref<1x128xf32, #tpu.memory_space<vmem>>, vector<1x128xf32>
    %11 = vector.broadcast %10 : vector<1x128xf32> to vector<8x128xf32>
    %12 = arith.addf %9, %11 : vector<8x128xf32>
    %cst_11 = arith.constant 0.000000e+00 : f32
    %13 = vector.broadcast %cst_11 : f32 to vector<8x128xf32>
    %14 = arith.maximumf %12, %13 : vector<8x128xf32>
    %c0_12 = arith.constant 0 : index
    %c0_13 = arith.constant 0 : index
    %15 = vector.load %arg6[%c0_12, %c0_13] : memref<128x8xf32, #tpu.memory_space<vmem>>, vector<128x8xf32>
    %cst_14 = arith.constant dense<0.000000e+00> : vector<8x8xf32>
    %16 = tpu.matmul %14, %15, %cst_14 {dimension_numbers = #tpu.dot_dimension_numbers<[1], [0], [0], [1], [0, 0, 1, 1], [], []>} : vector<8x128xf32>, vector<128x8xf32>, vector<8x8xf32> -> vector<8x8xf32>
    %c0_15 = arith.constant 0 : index
    %c0_16 = arith.constant 0 : index
    %17 = vector.load %arg7[%c0_15, %c0_16] : memref<1x8xf32, #tpu.memory_space<vmem>>, vector<1x8xf32>
    %18 = vector.broadcast %17 : vector<1x8xf32> to vector<8x8xf32>
    %19 = arith.addf %16, %18 : vector<8x8xf32>
    %c0_17 = arith.constant 0 : index
    %c0_18 = arith.constant 0 : index
    %20 = vector.load %arg8[%c0_17, %c0_18] : memref<8x8xf32, #tpu.memory_space<vmem>>, vector<8x8xf32>
    tpu.vector_store %arg8[%c0_17, %c0_18], %19 {strides = array<i32>} : memref<8x8xf32, #tpu.memory_space<vmem>>, vector<8x8xf32>,
    return
  }
  func.func @transform_0(%arg0: i32) -> (i32, i32) {
    %c0_i32 = arith.constant 0 : i32
    %c0_i32_0 = arith.constant 0 : i32
    return %arg0, %c0_i32 : i32, i32
  }
  func.func @transform_1(%arg0: i32) -> (i32, i32) {
    %c0_i32 = arith.constant 0 : i32
    %c0_i32_0 = arith.constant 0 : i32
    %c0_i32_1 = arith.constant 0 : i32
    return %c0_i32, %c0_i32_0 : i32, i32
  }
  func.func @transform_2(%arg0: i32) -> (i32, i32) {
    %c0_i32 = arith.constant 0 : i32
    %c0_i32_0 = arith.constant 0 : i32
    %c0_i32_1 = arith.constant 0 : i32
    return %c0_i32, %c0_i32_0 : i32, i32
  }
  func.func @transform_3(%arg0: i32) -> (i32, i32) {
    %c0_i32 = arith.constant 0 : i32
    %c0_i32_0 = arith.constant 0 : i32
    %c0_i32_1 = arith.constant 0 : i32
    return %c0_i32, %c0_i32_0 : i32, i32
  }
  func.func @transform_4(%arg0: i32) -> (i32, i32) {
    %c0_i32 = arith.constant 0 : i32
    %c0_i32_0 = arith.constant 0 : i32
    %c0_i32_1 = arith.constant 0 : i32
    return %c0_i32, %c0_i32_0 : i32, i32
  }
  func.func @transform_5(%arg0: i32) -> (i32, i32) {
    %c0_i32 = arith.constant 0 : i32
    %c0_i32_0 = arith.constant 0 : i32
    %c0_i32_1 = arith.constant 0 : i32
    return %c0_i32, %c0_i32_0 : i32, i32
  }
  func.func @transform_6(%arg0: i32) -> (i32, i32) {
    %c0_i32 = arith.constant 0 : i32
    %c0_i32_0 = arith.constant 0 : i32
    %c0_i32_1 = arith.constant 0 : i32
    return %c0_i32, %c0_i32_0 : i32, i32
  }
  func.func @transform_7(%arg0: i32) -> (i32, i32) {
    %c0_i32 = arith.constant 0 : i32
    %c0_i32_0 = arith.constant 0 : i32
    return %arg0, %c0_i32 : i32, i32
  }
}

</mosaic_0001>

<bundles_post_ra>
// kernel: tpu_custom_call.1
= control target key start
LH: loop header
LB: loop body
LE: loop exit
PB: predicated region body
PF: predicated region fallthrough
CT: control target
= control target key end

     0   :  { %12 = vsyncpa [#allocation3], 0  ;;  %s735_s0 = inlined_call_operand.vmem [shape: f32[8,16], index: 0, kind: input, shape index: {}]   ;;  %s736_s1 = inlined_call_operand.hbm [shape: f32[16,128], index: 1, kind: input, shape index: {}]   ;;  %s737_s2 = inlined_call_operand.vmem [shape: f32[1,128], index: 2, kind: input, shape index: {}]   ;;  %s738_s3 = inlined_call_operand.vmem [shape: f32[128,128], index: 3, kind: input, shape index: {}]   ;;  %s739_s4 = inlined_call_operand.hbm [shape: f32[1,128], index: 4, kind: input, shape index: {}]   ;;  %s740_s5 = inlined_call_operand.vmem [shape: f32[128,8], index: 5, kind: input, shape index: {}]   ;;  %s741_s6 = inlined_call_operand.vmem [shape: f32[1,8], index: 6, kind: input, shape index: {}]   ;;  %s742_s7 = inlined_call_operand.hbm [shape: f32[8,8], index: 7, kind: output, shape index: {}]  }
   0x1   :  { %13 = vsyncpa [#allocation6], 0 }
   0x2   :  { %14 = vsyncpa [#allocation4], 0  ;;  %s534_s24 = smov [#allocation2]  }
   0x3   :  { %s22_s25 = sshll.u32 %s534_s24, 4  ;;  %s23_s25 = int_to_ptr.vmem [resolvable:$true] %s22_s25 }
   0x4   :  { %s476_s26 = scalar_lea.vmem %s23_s25, 256  ;;  %p481_p1 = scmp.lt.s32.totalorder %s23_s25, %s23_s25 }
   0x5   :  { %p477_p0 = scmp.ne.s32.totalorder %s23_s25, %s476_s26  ;;  %p482_p2 = scmp.lt.s32.totalorder %s476_s26, %s476_s26 }
   0x7   :  { %p483_p3 = por %p482_p2, %p481_p1 }
   0x9   :  { %p484_p4 = pnand %p483_p3, %p477_p0 }
   0xb   :  { %487 = shalt.err (!%p484_p4)
}
   0xc   :  { %s535_s27 = smov 128   ;;  %s536_s28 = smov 8  }
   0xd   :  { %28 = dma.hbm_to_vmem [thread:$0]  %s736_s1, 256, %s23_s25, [#allocation3], %s535_s27, %s535_s27, %s536_s28  }
   0xe   :  { %s537_s8 = smov [#allocation5]  }
   0xf   :  { %s39_s9 = sshll.u32 %s537_s8, 4  ;;  %s40_s9 = int_to_ptr.vmem [resolvable:$true] %s39_s9 }
  0x10   :  { %s496_s10 = scalar_lea.vmem %s40_s9, 16  ;;  %s500_s11 = scalar_lea.vmem %s40_s9, 32 }
  0x11   :  { %p497_p5 = scmp.ne.s32.totalorder %s40_s9, %s496_s10  ;;  %p501_p6 = scmp.lt.s32.totalorder %s40_s9, %s40_s9 }
  0x12   :  { %p502_p7 = scmp.lt.s32.totalorder %s500_s11, %s496_s10 }
  0x14   :  { %p503_p8 = por %p502_p7, %p501_p6 }
  0x16   :  { %p504_p9 = pnand %p503_p8, %p497_p5 }
  0x18   :  { %507 = shalt.err (!%p504_p9)
}
  0x19   :  { %42 = dma.hbm_to_vmem [thread:$0]  %s739_s4, 16, %s40_s9, [#allocation6]  }
  0x1a   :  { %528 = dma.done.wait [#allocation3], 256  }
  0x1b   :  { %529 = vsyncadd [#allocation3], 4294967040 }
  0x1c   :  { %530 = dma.done.wait [#allocation6], 16  }
  0x1d   :  { %531 = vsyncadd [#allocation6], 4294967280  ;;  %v538_v0 = vmov 0.0   ;;  %vm539_vm0 = vmmov 0   ;;  %v55_v1 = vld [vmem:[#allocation2 + $0x8] sm:$0xff]  ;;  %v54_v2 = vld [vmem:[#allocation2] sm:$0xff] }
  0x1e   :  { %384 = vmatprep.subr.mxu0 %v538_v0  ;;  %388 = vmatprep.mubr.msk.f32.mxu0 %vm539_vm0, %v538_v0  ;;  %v53_v3 = vld [vmem:[%s735_s0] sm:$0xff]  ;;  %vm63_vm1 = vcmask 130048   ;;  %v153_v4 = vld [vmem:[%s738_s3 + $0x78] sm:$0xff]  ;;  %v152_v5 = vld [vmem:[%s738_s3 + $0x70] sm:$0xff]  ;;  %s540_s26 = smov [#allocation7]   ;;  %vm325_vm2 = vcmask 64512  }
  0x1f   :  { %391 = vmatprep.subr.mxu1 %v538_v0  ;;  %423 = vmatprep.mubr.msk.f32.mxu1 %vm539_vm0, %v538_v0  ;;  %v151_v6 = vld [vmem:[%s738_s3 + $0x68] sm:$0xff]  ;;  %v150_v7 = vld [vmem:[%s738_s3 + $0x60] sm:$0xff]  ;;  %v149_v8 = vld [vmem:[%s738_s3 + $0x58] sm:$0xff]  ;;  %s333_s27 = sshll.u32 %s540_s26, 4  ;;  %s334_s27 = int_to_ptr.vmem [resolvable:$true] %s333_s27 }
  0x20   :  { %385 = vmatpush3.msra.mxu0 %v55_v1  ;;  %392 = vmatpush3.msra.mxu1 %v153_v4  ;;  %v148_v9 = vld [vmem:[%s738_s3 + $0x50] sm:$0xff]  ;;  %v147_v10 = vld [vmem:[%s738_s3 + $0x48] sm:$0xff]  ;;  %v146_v11 = vld [vmem:[%s738_s3 + $0x40] sm:$0xff]  ;;  %p513_p11 = scmp.lt.s32.totalorder %s334_s27, %s334_s27 }
  0x21   :  { %386 = vmatprep.subr.mxu0 %v538_v0  ;;  %393 = vmatprep.subr.mxu1 %v538_v0  ;;  %v145_v12 = vld [vmem:[%s738_s3 + $0x38] sm:$0xff]  ;;  %v144_v13 = vld [vmem:[%s738_s3 + $0x30] sm:$0xff]  ;;  %v143_v14 = vld [vmem:[%s738_s3 + $0x28] sm:$0xff] }
  0x22   :  { %387 = vmatpush3.msra.mxu0 %v54_v2  ;;  %394 = vmatpush3.msra.mxu1 %v152_v5  ;;  %v142_v15 = vld [vmem:[%s738_s3 + $0x20] sm:$0xff]  ;;  %v141_v16 = vld [vmem:[%s738_s3 + $0x18] sm:$0xff]  ;;  %v140_v17 = vld [vmem:[%s738_s3 + $0x10] sm:$0xff] }
  0x23   :  { %389 = vmatmul.mubr.msk.f32.vlgmr.msra.gmra.mxu0 %vm63_vm1, %v53_v3  ;;  %395 = vmatprep.subr.mxu1 %v538_v0  ;;  %v139_v18 = vld [vmem:[%s738_s3 + $0x8] sm:$0xff]  ;;  %v138_v19 = vld [vmem:[%s738_s3] sm:$0xff]  ;;  %v247_v20 = vld [vmem:[%s740_s5 + $0x78] sm:$0xff] }
  0x24   :  { %426 = vmatprep.subr.mxu0 %v538_v0  ;;  %396 = vmatpush3.msra.mxu1 %v151_v6  ;;  %v246_v21 = vld [vmem:[%s740_s5 + $0x70] sm:$0xff]  ;;  %v245_v22 = vld [vmem:[%s740_s5 + $0x68] sm:$0xff]  ;;  %v244_v23 = vld [vmem:[%s740_s5 + $0x60] sm:$0xff] }
  0x25   :  { %458 = vmatprep.mubr.msk.f32.mxu0 %vm539_vm0, %v538_v0  ;;  %397 = vmatprep.subr.mxu1 %v538_v0  ;;  %v243_v24 = vld [vmem:[%s740_s5 + $0x58] sm:$0xff]  ;;  %v242_v25 = vld [vmem:[%s740_s5 + $0x50] sm:$0xff]  ;;  %v241_v26 = vld [vmem:[%s740_s5 + $0x48] sm:$0xff] }
  0x26   :  { %398 = vmatpush3.msra.mxu1 %v150_v7  ;;  %427 = vmatpush3.msra.mxu0 %v247_v20  ;;  %v240_v27 = vld [vmem:[%s740_s5 + $0x40] sm:$0xff]  ;;  %v239_v28 = vld [vmem:[%s740_s5 + $0x38] sm:$0xff]  ;;  %v238_v29 = vld [vmem:[%s740_s5 + $0x30] sm:$0xff] }
  0x27   :  { %399 = vmatprep.subr.mxu1 %v538_v0  ;;  %428 = vmatprep.subr.mxu0 %v538_v0  ;;  %v237_v30 = vld [vmem:[%s740_s5 + $0x28] sm:$0xff]  ;;  %v236_v31 = vld [vmem:[%s740_s5 + $0x20] sm:$0xff]  ;;  %v235_v32 = vld [vmem:[%s740_s5 + $0x18] sm:$0xff] }
  0x28   :  { %400 = vmatpush3.msra.mxu1 %v149_v8  ;;  %429 = vmatpush3.msra.mxu0 %v246_v21  ;;  %v343_v33 = vld [vmem:[%s737_s2] ss:$0 sm:$0xff]  ;;  %v234_v38 = vld [vmem:[%s740_s5 + $0x10] sm:$0xff]  ;;  %v233_v39 = vld [vmem:[%s740_s5 + $0x8] sm:$0xff] }
  0x29   :  { %401 = vmatprep.subr.mxu1 %v538_v0  ;;  %430 = vmatprep.subr.mxu0 %v538_v0  ;;  %v232_v40 = vld [vmem:[%s740_s5] sm:$0xff]  ;;  %v345_v41 = vld [vmem:[#allocation5] ss:$0 sm:$0xff]  ;;  %s508_s5 = scalar_lea.vmem %s334_s27, 128 }
  0x2a   :  { %402 = vmatpush3.msra.mxu1 %v148_v9  ;;  %431 = vmatpush3.msra.mxu0 %v245_v22  ;;  %v346_v46 = vld [vmem:[%s741_s6] ss:$0 sm:$0xff]  ;;  %p509_p10 = scmp.ne.s32.totalorder %s334_s27, %s508_s5  ;;  %p514_p12 = scmp.lt.s32.totalorder %s508_s5, %s508_s5 }
  0x2b   :  { %403 = vmatprep.subr.mxu1 %v538_v0  ;;  %432 = vmatprep.subr.mxu0 %v538_v0 }
  0x2c   :  { %404 = vmatpush3.msra.mxu1 %v147_v10  ;;  %433 = vmatpush3.msra.mxu0 %v244_v23  ;;  %p515_p13 = por %p514_p12, %p513_p11 }
  0x2d   :  { %405 = vmatprep.subr.mxu1 %v538_v0  ;;  %434 = vmatprep.subr.mxu0 %v538_v0 }
  0x2e   :  { %406 = vmatpush3.msra.mxu1 %v146_v11  ;;  %435 = vmatpush3.msra.mxu0 %v243_v24  ;;  %p516_p0 = pnand %p515_p13, %p509_p10 }
  0x2f   :  { %407 = vmatprep.subr.mxu1 %v538_v0  ;;  %436 = vmatprep.subr.mxu0 %v538_v0 }
  0x30   :  { %408 = vmatpush3.msra.mxu1 %v145_v12  ;;  %437 = vmatpush3.msra.mxu0 %v242_v25 }
  0x31   :  { %409 = vmatprep.subr.mxu1 %v538_v0  ;;  %438 = vmatprep.subr.mxu0 %v538_v0 }
  0x32   :  { %410 = vmatpush3.msra.mxu1 %v144_v13  ;;  %439 = vmatpush3.msra.mxu0 %v241_v26 }
  0x33   :  { %411 = vmatprep.subr.mxu1 %v538_v0  ;;  %440 = vmatprep.subr.mxu0 %v538_v0 }
  0x34   :  { %412 = vmatpush3.msra.mxu1 %v143_v14  ;;  %441 = vmatpush3.msra.mxu0 %v240_v27 }
  0x35   :  { %413 = vmatprep.subr.mxu1 %v538_v0  ;;  %442 = vmatprep.subr.mxu0 %v538_v0 }
  0x36   :  { %414 = vmatpush3.msra.mxu1 %v142_v15  ;;  %443 = vmatpush3.msra.mxu0 %v239_v28 }
  0x37   :  { %415 = vmatprep.subr.mxu1 %v538_v0  ;;  %444 = vmatprep.subr.mxu0 %v538_v0 }
  0x38   :  { %416 = vmatpush3.msra.mxu1 %v141_v16  ;;  %445 = vmatpush3.msra.mxu0 %v238_v29 }
  0x39   :  { %417 = vmatprep.subr.mxu1 %v538_v0  ;;  %446 = vmatprep.subr.mxu0 %v538_v0 }
  0x3a   :  { %418 = vmatpush3.msra.mxu1 %v140_v17  ;;  %447 = vmatpush3.msra.mxu0 %v237_v30 }
  0x3b   :  { %419 = vmatprep.subr.mxu1 %v538_v0  ;;  %448 = vmatprep.subr.mxu0 %v538_v0 }
  0x3c   :  { %420 = vmatpush3.msra.mxu1 %v139_v18  ;;  %449 = vmatpush3.msra.mxu0 %v236_v31 }
  0x3d   :  { %421 = vmatprep.subr.mxu1 %v538_v0  ;;  %450 = vmatprep.subr.mxu0 %v538_v0 }
  0x3e   :  { %422 = vmatpush3.msra.mxu1 %v138_v19  ;;  %451 = vmatpush3.msra.mxu0 %v235_v32 }
  0x3f   :  { %452 = vmatprep.subr.mxu0 %v538_v0 }
  0x40   :  { %453 = vmatpush3.msra.mxu0 %v234_v38 }
  0x41   :  { %454 = vmatprep.subr.mxu0 %v538_v0 }
  0x42   :  { %455 = vmatpush3.msra.mxu0 %v233_v39 }
  0x43   :  { %456 = vmatprep.subr.mxu0 %v538_v0 }
  0x44   :  { %457 = vmatpush3.msra.mxu0 %v232_v40 }
  0xe3   :  { %v133_v34 = vpop.f32.mrf.mxu0 }
  0xe4   :  { %v134_v35 = vadd.f32 %v343_v33, %v133_v34 }
  0xe5   :  { %v390_v36 = vpop.f32.mrf.mxu0 }
  0xe6   :  { %v137_v37 = vmax.f32 %v134_v35, 0.0 }
  0xe8   :  { %424 = vmatmul.mubr.f32.vlgmr.msra.gmra.mxu1 %v137_v37 }
 0x1a8   :  { %v227_v42 = vpop.f32.mrf.mxu1 }
 0x1a9   :  { %v228_v43 = vadd.f32 %v345_v41, %v227_v42 }
 0x1aa   :  { %v425_v44 = vpop.f32.mrf.mxu1 }
 0x1ab   :  { %v231_v45 = vmax.f32 %v228_v43, 0.0 }
 0x1ad   :  { %459 = vmatmul.mubr.f32.vlgmr.msra.gmra.mxu0 %v231_v45 }
 0x26d   :  { %v321_v47 = vpop.f32.mrf.mxu0 }
 0x26e   :  { %v322_v48 = vadd.f32 %v346_v46, %v321_v47 }
 0x26f   :  { %v460_v49 = vpop.f32.mrf.mxu0 }
 0x270   :  { %326 = vst.msk [vmem:[#allocation7] sm:$0xff] %vm325_vm2, %v322_v48 }
 0x271   :  { %519 = shalt.err (!%p516_p0)
}
 0x272   :  { %336 = dma.vmem_to_hbm [thread:$0]  %s334_s27, 128, %s742_s7, [#allocation4]  }
 0x273   :  { %532 = dma.done.wait [#allocation4], 128  }
 0x274   :  { %533 = vsyncadd [#allocation4], 4294967168 }
 0x275   :  { %340 = vsyncpa [#allocation3], 1 }
 0x276   :  { %341 = vsyncpa [#allocation6], 1 }
 0x277   :  { %342 = vsyncpa [#allocation4], 1 }

// kernel: tpu_custom_call.1
= control target key start
LH: loop header
LB: loop body
LE: loop exit
PB: predicated region body
PF: predicated region fallthrough
CT: control target
= control target key end

     0   :  { %12 = vsyncpa [#allocation3], 0  ;;  %s735_s0 = inlined_call_operand.vmem [shape: f32[8,16], index: 0, kind: input, shape index: {}]   ;;  %s736_s1 = inlined_call_operand.hbm [shape: f32[16,128], index: 1, kind: input, shape index: {}]   ;;  %s737_s2 = inlined_call_operand.vmem [shape: f32[1,128], index: 2, kind: input, shape index: {}]   ;;  %s738_s3 = inlined_call_operand.vmem [shape: f32[128,128], index: 3, kind: input, shape index: {}]   ;;  %s739_s4 = inlined_call_operand.hbm [shape: f32[1,128], index: 4, kind: input, shape index: {}]   ;;  %s740_s5 = inlined_call_operand.vmem [shape: f32[128,8], index: 5, kind: input, shape index: {}]   ;;  %s741_s6 = inlined_call_operand.vmem [shape: f32[1,8], index: 6, kind: input, shape index: {}]   ;;  %s742_s7 = inlined_call_operand.hbm [shape: f32[8,8], index: 7, kind: output, shape index: {}]  }
   0x1   :  { %13 = vsyncpa [#allocation6], 0 }
   0x2   :  { %14 = vsyncpa [#allocation4], 0  ;;  %s534_s24 = smov [#allocation2]  }
   0x3   :  { %s22_s25 = sshll.u32 %s534_s24, 4  ;;  %s23_s25 = int_to_ptr.vmem [resolvable:$true] %s22_s25 }
   0x4   :  { %s476_s26 = scalar_lea.vmem %s23_s25, 256  ;;  %p481_p1 = scmp.lt.s32.totalorder %s23_s25, %s23_s25 }
   0x5   :  { %p477_p0 = scmp.ne.s32.totalorder %s23_s25, %s476_s26  ;;  %p482_p2 = scmp.lt.s32.totalorder %s476_s26, %s476_s26 }
   0x7   :  { %p483_p3 = por %p482_p2, %p481_p1 }
   0x9   :  { %p484_p4 = pnand %p483_p3, %p477_p0 }
   0xb   :  { %487 = shalt.err (!%p484_p4)
}
   0xc   :  { %s535_s27 = smov 128   ;;  %s536_s28 = smov 8  }
   0xd   :  { %28 = dma.hbm_to_vmem [thread:$0]  %s736_s1, 256, %s23_s25, [#allocation3], %s535_s27, %s535_s27, %s536_s28  }
   0xe   :  { %s537_s8 = smov [#allocation5]  }
   0xf   :  { %s39_s9 = sshll.u32 %s537_s8, 4  ;;  %s40_s9 = int_to_ptr.vmem [resolvable:$true] %s39_s9 }
  0x10   :  { %s496_s10 = scalar_lea.vmem %s40_s9, 16  ;;  %s500_s11 = scalar_lea.vmem %s40_s9, 32 }
  0x11   :  { %p497_p5 = scmp.ne.s32.totalorder %s40_s9, %s496_s10  ;;  %p501_p6 = scmp.lt.s32.totalorder %s40_s9, %s40_s9 }
  0x12   :  { %p502_p7 = scmp.lt.s32.totalorder %s500_s11, %s496_s10 }
  0x14   :  { %p503_p8 = por %p502_p7, %p501_p6 }
  0x16   :  { %p504_p9 = pnand %p503_p8, %p497_p5 }
  0x18   :  { %507 = shalt.err (!%p504_p9)
}
  0x19   :  { %42 = dma.hbm_to_vmem [thread:$0]  %s739_s4, 16, %s40_s9, [#allocation6]  }
  0x1a   :  { %528 = dma.done.wait [#allocation3], 256  }
  0x1b   :  { %529 = vsyncadd [#allocation3], 4294967040 }
  0x1c   :  { %530 = dma.done.wait [#allocation6], 16  }
  0x1d   :  { %531 = vsyncadd [#allocation6], 4294967280  ;;  %v538_v0 = vmov 0.0   ;;  %vm539_vm0 = vmmov 0   ;;  %v55_v1 = vld [vmem:[#allocation2 + $0x8] sm:$0xff]  ;;  %v54_v2 = vld [vmem:[#allocation2] sm:$0xff] }
  0x1e   :  { %384 = vmatprep.subr.mxu0 %v538_v0  ;;  %388 = vmatprep.mubr.msk.f32.mxu0 %vm539_vm0, %v538_v0  ;;  %v53_v3 = vld [vmem:[%s735_s0] sm:$0xff]  ;;  %vm63_vm1 = vcmask 130048   ;;  %v153_v4 = vld [vmem:[%s738_s3 + $0x78] sm:$0xff]  ;;  %v152_v5 = vld [vmem:[%s738_s3 + $0x70] sm:$0xff]  ;;  %s540_s26 = smov [#allocation7]   ;;  %vm325_vm2 = vcmask 64512  }
  0x1f   :  { %391 = vmatprep.subr.mxu1 %v538_v0  ;;  %423 = vmatprep.mubr.msk.f32.mxu1 %vm539_vm0, %v538_v0  ;;  %v151_v6 = vld [vmem:[%s738_s3 + $0x68] sm:$0xff]  ;;  %v150_v7 = vld [vmem:[%s738_s3 + $0x60] sm:$0xff]  ;;  %v149_v8 = vld [vmem:[%s738_s3 + $0x58] sm:$0xff]  ;;  %s333_s27 = sshll.u32 %s540_s26, 4  ;;  %s334_s27 = int_to_ptr.vmem [resolvable:$true] %s333_s27 }
  0x20   :  { %385 = vmatpush3.msra.mxu0 %v55_v1  ;;  %392 = vmatpush3.msra.mxu1 %v153_v4  ;;  %v148_v9 = vld [vmem:[%s738_s3 + $0x50] sm:$0xff]  ;;  %v147_v10 = vld [vmem:[%s738_s3 + $0x48] sm:$0xff]  ;;  %v146_v11 = vld [vmem:[%s738_s3 + $0x40] sm:$0xff]  ;;  %p513_p11 = scmp.lt.s32.totalorder %s334_s27, %s334_s27 }
  0x21   :  { %386 = vmatprep.subr.mxu0 %v538_v0  ;;  %393 = vmatprep.subr.mxu1 %v538_v0  ;;  %v145_v12 = vld [vmem:[%s738_s3 + $0x38] sm:$0xff]  ;;  %v144_v13 = vld [vmem:[%s738_s3 + $0x30] sm:$0xff]  ;;  %v143_v14 = vld [vmem:[%s738_s3 + $0x28] sm:$0xff] }
  0x22   :  { %387 = vmatpush3.msra.mxu0 %v54_v2  ;;  %394 = vmatpush3.msra.mxu1 %v152_v5  ;;  %v142_v15 = vld [vmem:[%s738_s3 + $0x20] sm:$0xff]  ;;  %v141_v16 = vld [vmem:[%s738_s3 + $0x18] sm:$0xff]  ;;  %v140_v17 = vld [vmem:[%s738_s3 + $0x10] sm:$0xff] }
  0x23   :  { %389 = vmatmul.mubr.msk.f32.vlgmr.msra.gmra.mxu0 %vm63_vm1, %v53_v3  ;;  %395 = vmatprep.subr.mxu1 %v538_v0  ;;  %v139_v18 = vld [vmem:[%s738_s3 + $0x8] sm:$0xff]  ;;  %v138_v19 = vld [vmem:[%s738_s3] sm:$0xff]  ;;  %v247_v20 = vld [vmem:[%s740_s5 + $0x78] sm:$0xff] }
  0x24   :  { %426 = vmatprep.subr.mxu0 %v538_v0  ;;  %396 = vmatpush3.msra.mxu1 %v151_v6  ;;  %v246_v21 = vld [vmem:[%s740_s5 + $0x70] sm:$0xff]  ;;  %v245_v22 = vld [vmem:[%s740_s5 + $0x68] sm:$0xff]  ;;  %v244_v23 = vld [vmem:[%s740_s5 + $0x60] sm:$0xff] }
  0x25   :  { %458 = vmatprep.mubr.msk.f32.mxu0 %vm539_vm0, %v538_v0  ;;  %397 = vmatprep.subr.mxu1 %v538_v0  ;;  %v243_v24 = vld [vmem:[%s740_s5 + $0x58] sm:$0xff]  ;;  %v242_v25 = vld [vmem:[%s740_s5 + $0x50] sm:$0xff]  ;;  %v241_v26 = vld [vmem:[%s740_s5 + $0x48] sm:$0xff] }
  0x26   :  { %398 = vmatpush3.msra.mxu1 %v150_v7  ;;  %427 = vmatpush3.msra.mxu0 %v247_v20  ;;  %v240_v27 = vld [vmem:[%s740_s5 + $0x40] sm:$0xff]  ;;  %v239_v28 = vld [vmem:[%s740_s5 + $0x38] sm:$0xff]  ;;  %v238_v29 = vld [vmem:[%s740_s5 + $0x30] sm:$0xff] }
  0x27   :  { %399 = vmatprep.subr.mxu1 %v538_v0  ;;  %428 = vmatprep.subr.mxu0 %v538_v0  ;;  %v237_v30 = vld [vmem:[%s740_s5 + $0x28] sm:$0xff]  ;;  %v236_v31 = vld [vmem:[%s740_s5 + $0x20] sm:$0xff]  ;;  %v235_v32 = vld [vmem:[%s740_s5 + $0x18] sm:$0xff] }
  0x28   :  { %400 = vmatpush3.msra.mxu1 %v149_v8  ;;  %429 = vmatpush3.msra.mxu0 %v246_v21  ;;  %v343_v33 = vld [vmem:[%s737_s2] ss:$0 sm:$0xff]  ;;  %v234_v38 = vld [vmem:[%s740_s5 + $0x10] sm:$0xff]  ;;  %v233_v39 = vld [vmem:[%s740_s5 + $0x8] sm:$0xff] }
  0x29   :  { %401 = vmatprep.subr.mxu1 %v538_v0  ;;  %430 = vmatprep.subr.mxu0 %v538_v0  ;;  %v232_v40 = vld [vmem:[%s740_s5] sm:$0xff]  ;;  %v345_v41 = vld [vmem:[#allocation5] ss:$0 sm:$0xff]  ;;  %s508_s5 = scalar_lea.vmem %s334_s27, 128 }
  0x2a   :  { %402 = vmatpush3.msra.mxu1 %v148_v9  ;;  %431 = vmatpush3.msra.mxu0 %v245_v22  ;;  %v346_v46 = vld [vmem:[%s741_s6] ss:$0 sm:$0xff]  ;;  %p509_p10 = scmp.ne.s32.totalorder %s334_s27, %s508_s5  ;;  %p514_p12 = scmp.lt.s32.totalorder %s508_s5, %s508_s5 }
  0x2b   :  { %403 = vmatprep.subr.mxu1 %v538_v0  ;;  %432 = vmatprep.subr.mxu0 %v538_v0 }
  0x2c   :  { %404 = vmatpush3.msra.mxu1 %v147_v10  ;;  %433 = vmatpush3.msra.mxu0 %v244_v23  ;;  %p515_p13 = por %p514_p12, %p513_p11 }
  0x2d   :  { %405 = vmatprep.subr.mxu1 %v538_v0  ;;  %434 = vmatprep.subr.mxu0 %v538_v0 }
  0x2e   :  { %406 = vmatpush3.msra.mxu1 %v146_v11  ;;  %435 = vmatpush3.msra.mxu0 %v243_v24  ;;  %p516_p0 = pnand %p515_p13, %p509_p10 }
  0x2f   :  { %407 = vmatprep.subr.mxu1 %v538_v0  ;;  %436 = vmatprep.subr.mxu0 %v538_v0 }
  0x30   :  { %408 = vmatpush3.msra.mxu1 %v145_v12  ;;  %437 = vmatpush3.msra.mxu0 %v242_v25 }
  0x31   :  { %409 = vmatprep.subr.mxu1 %v538_v0  ;;  %438 = vmatprep.subr.mxu0 %v538_v0 }
  0x32   :  { %410 = vmatpush3.msra.mxu1 %v144_v13  ;;  %439 = vmatpush3.msra.mxu0 %v241_v26 }
  0x33   :  { %411 = vmatprep.subr.mxu1 %v538_v0  ;;  %440 = vmatprep.subr.mxu0 %v538_v0 }
  0x34   :  { %412 = vmatpush3.msra.mxu1 %v143_v14  ;;  %441 = vmatpush3.msra.mxu0 %v240_v27 }
  0x35   :  { %413 = vmatprep.subr.mxu1 %v538_v0  ;;  %442 = vmatprep.subr.mxu0 %v538_v0 }
  0x36   :  { %414 = vmatpush3.msra.mxu1 %v142_v15  ;;  %443 = vmatpush3.msra.mxu0 %v239_v28 }
  0x37   :  { %415 = vmatprep.subr.mxu1 %v538_v0  ;;  %444 = vmatprep.subr.mxu0 %v538_v0 }
  0x38   :  { %416 = vmatpush3.msra.mxu1 %v141_v16  ;;  %445 = vmatpush3.msra.mxu0 %v238_v29 }
  0x39   :  { %417 = vmatprep.subr.mxu1 %v538_v0  ;;  %446 = vmatprep.subr.mxu0 %v538_v0 }
  0x3a   :  { %418 = vmatpush3.msra.mxu1 %v140_v17  ;;  %447 = vmatpush3.msra.mxu0 %v237_v30 }
  0x3b   :  { %419 = vmatprep.subr.mxu1 %v538_v0  ;;  %448 = vmatprep.subr.mxu0 %v538_v0 }
  0x3c   :  { %420 = vmatpush3.msra.mxu1 %v139_v18  ;;  %449 = vmatpush3.msra.mxu0 %v236_v31 }
  0x3d   :  { %421 = vmatprep.subr.mxu1 %v538_v0  ;;  %450 = vmatprep.subr.mxu0 %v538_v0 }
  0x3e   :  { %422 = vmatpush3.msra.mxu1 %v138_v19  ;;  %451 = vmatpush3.msra.mxu0 %v235_v32 }
  0x3f   :  { %452 = vmatprep.subr.mxu0 %v538_v0 }
  0x40   :  { %453 = vmatpush3.msra.mxu0 %v234_v38 }
  0x41   :  { %454 = vmatprep.subr.mxu0 %v538_v0 }
  0x42   :  { %455 = vmatpush3.msra.mxu0 %v233_v39 }
  0x43   :  { %456 = vmatprep.subr.mxu0 %v538_v0 }
  0x44   :  { %457 = vmatpush3.msra.mxu0 %v232_v40 }
  0xe3   :  { %v133_v34 = vpop.f32.mrf.mxu0 }
  0xe4   :  { %v134_v35 = vadd.f32 %v343_v33, %v133_v34 }
  0xe5   :  { %v390_v36 = vpop.f32.mrf.mxu0 }
  0xe6   :  { %v137_v37 = vmax.f32 %v134_v35, 0.0 }
  0xe8   :  { %424 = vmatmul.mubr.f32.vlgmr.msra.gmra.mxu1 %v137_v37 }
 0x1a8   :  { %v227_v42 = vpop.f32.mrf.mxu1 }
 0x1a9   :  { %v228_v43 = vadd.f32 %v345_v41, %v227_v42 }
 0x1aa   :  { %v425_v44 = vpop.f32.mrf.mxu1 }
 0x1ab   :  { %v231_v45 = vmax.f32 %v228_v43, 0.0 }
 0x1ad   :  { %459 = vmatmul.mubr.f32.vlgmr.msra.gmra.mxu0 %v231_v45 }
 0x26d   :  { %v321_v47 = vpop.f32.mrf.mxu0 }
 0x26e   :  { %v322_v48 = vadd.f32 %v346_v46, %v321_v47 }
 0x26f   :  { %v460_v49 = vpop.f32.mrf.mxu0 }
 0x270   :  { %326 = vst.msk [vmem:[#allocation7] sm:$0xff] %vm325_vm2, %v322_v48 }
 0x271   :  { %519 = shalt.err (!%p516_p0)
}
 0x272   :  { %336 = dma.vmem_to_hbm [thread:$0]  %s334_s27, 128, %s742_s7, [#allocation4]  }
 0x273   :  { %532 = dma.done.wait [#allocation4], 128  }
 0x274   :  { %533 = vsyncadd [#allocation4], 4294967168 }
 0x275   :  { %340 = vsyncpa [#allocation3], 1 }
 0x276   :  { %341 = vsyncpa [#allocation6], 1 }
 0x277   :  { %342 = vsyncpa [#allocation4], 1 }

</bundles_post_ra>
